<compile_context>
chip_gen: v6e
topology: v6e:2x2x1
jax: 0.10.0
libtpu: 0.0.40
codegen_flags: <defaults>
</compile_context>

<pallas_src>
import functools

import jax
import jax.numpy as jnp
from jax.experimental import pallas as pl
from jax.experimental.pallas import tpu as pltpu


def _gem_kernel(p_ref, x_ref, o_ref, *, eps):
    # p_ref : SMEM (1, 1) f32  -- learnable exponent p
    # x_ref : VMEM (TR, S)     -- TR rows of (n, c), S = H*W spatial elems
    # o_ref : VMEM (TR, 1) f32 -- pooled output per (n, c) row
    p = p_ref[0, 0]
    x = x_ref[...].astype(jnp.float32)        # native-dtype load, cast in-kernel

    # clamp(min=eps) then x**p.  x >= eps > 0, so log is safe; the dynamic
    # exponent is exp(p * log(x)), which maps onto the EUP.
    xc = jnp.maximum(x, jnp.float32(eps))
    xp = jnp.exp(p * jnp.log(xc))

    # full-window average pool == mean over the spatial (lane) axis, in f32
    mean = jnp.mean(xp, axis=-1, keepdims=True)

    # final (1/p) root
    o_ref[...] = jnp.exp(jnp.log(mean) / p)


def gem_pallas(x, p, eps=1e-6):
    """GeM pooling. x: (N, C, H, W), p: scalar parameter. Returns (N, C, 1, 1)."""
    if not eps > 0.0:
        raise ValueError("GeM requires eps > 0 (log/pow safety).")
    N, C, H, W = x.shape
    R, S = N * C, H * W

    x2 = x.reshape(R, S)                      # keep native dtype (no wrapper cast)

    # Row-tile sizing: multiple of 8, ~2 MiB per (double-buffered) block,
    # never larger than the (8-rounded) number of rows.
    bytes_per_row = S * 4                     # f32 working set inside the kernel
    r_up8 = ((R + 7) // 8) * 8
    tr = min(1024, max(1, (2 * 1024 * 1024) // bytes_per_row), r_up8)
    tr = max(8, (tr // 8) * 8)
    r_pad = ((R + tr - 1) // tr) * tr
    if r_pad > R:
        # Pad rows with a positive constant so clamp/log on padding is benign;
        # padded rows are sliced away after the call.
        x2 = jnp.concatenate(
            [x2, jnp.ones((r_pad - R, S), dtype=x2.dtype)], axis=0)
    num_tiles = r_pad // tr

    p2 = jnp.asarray(p, dtype=jnp.float32).reshape(1, 1)

    out2 = pl.pallas_call(
        functools.partial(_gem_kernel, eps=float(eps)),
        out_shape=jax.ShapeDtypeStruct((r_pad, 1), jnp.float32),
        grid=(num_tiles,),
        in_specs=[
            pl.BlockSpec((1, 1), lambda i: (0, 0), memory_space=pltpu.SMEM),
            pl.BlockSpec((tr, S), lambda i: (i, 0)),
        ],
        out_specs=pl.BlockSpec((tr, 1), lambda i: (i, 0)),
        compiler_params=pltpu.CompilerParams(
            dimension_semantics=("parallel",),
            vmem_limit_bytes=32 * 1024 * 1024,
        ),
    )(p2, x2)

    # NOTE: for very large feature maps (H*W >~ 8K) a second ("arbitrary") grid
    # axis over S with a VMEM accumulator would keep tiles small; unnecessary
    # at typical GeM shapes (S = H*W of a CNN head).
    return out2[:R].reshape(N, C, 1, 1).astype(x.dtype)


def gem_reference(x, p, eps=1e-6):
    """Pure-JAX reference of F.avg_pool2d(clamp(x, eps)**p, (H, W))**(1/p)."""
    xf = x.astype(jnp.float32)
    xc = jnp.maximum(xf, jnp.float32(eps))
    xp = xc ** jnp.float32(p)
    mean = jnp.mean(xp, axis=(-2, -1), keepdims=True)
    return (mean ** (1.0 / jnp.float32(p))).astype(x.dtype)


if __name__ == "__main__":
    key = jax.random.PRNGKey(0)
    p = jnp.float32(3.0)        # mirrors nn.Parameter(torch.ones(1) * 3)
    eps = 1e-6

    # Primary check: f32 input at the module's small shape.
    N, C, H, W = 2, 4, 16, 16
    x = jax.random.normal(key, (N, C, H, W), dtype=jnp.float32)
    y = gem_pallas(x, p, eps)
    jax.block_until_ready(y)
    y_ref = gem_reference(x, p, eps)
    assert y.shape == (N, C, 1, 1)
    assert jnp.allclose(y, y_ref, rtol=1e-4, atol=1e-5), (
        f"f32 max abs err = {jnp.max(jnp.abs(y - y_ref))}")

    # Row-padding path: N*C not a multiple of the row tile.
    x3 = jax.random.normal(jax.random.PRNGKey(1), (3, 5, 7, 7), dtype=jnp.float32)
    y3 = gem_pallas(x3, p, eps)
    jax.block_until_ready(y3)
    assert jnp.allclose(y3, gem_reference(x3, p, eps), rtol=1e-4, atol=1e-5)

    # Native-dtype path: bf16 input, cast happens inside the kernel.
    xb = jax.random.normal(jax.random.PRNGKey(2), (N, C, H, W)).astype(jnp.bfloat16)
    yb = gem_pallas(xb, p, eps)
    jax.block_until_ready(yb)
    yb_ref = gem_reference(xb, p, eps)
    assert jnp.allclose(yb.astype(jnp.float32), yb_ref.astype(jnp.float32),
                        rtol=2e-2, atol=2e-2)

    print("KERNEL_OK")
</pallas_src>

<mosaic_0001>
module attributes {stable_mosaic.version = 11 : i64} {
  func.func @_gem_kernel(%arg0: i32, %arg1: memref<1x1xf32, #tpu.memory_space<smem>>, %arg2: memref<8x256xf32, #tpu.memory_space<vmem>>, %arg3: memref<8x1xf32, #tpu.memory_space<vmem>>) attributes {dimension_semantics = [#tpu.dimension_semantics<parallel>], iteration_bounds = array<i64: 1>, scalar_prefetch = 0 : i64, scratch_operands = 0 : i64, tpu.core_type = #tpu.core_type<tc>, window_params = [{transform_indices = @transform_0, window_bounds = array<i64: 1, 1>}, {transform_indices = @transform_1, window_bounds = array<i64: 8, 256>}, {transform_indices = @transform_2, window_bounds = array<i64: 8, 1>}]} {
    %c0 = arith.constant 0 : index
    %c0_0 = arith.constant 0 : index
    %0 = memref.load %arg1[%c0, %c0_0] : memref<1x1xf32, #tpu.memory_space<smem>>
    %c0_1 = arith.constant 0 : index
    %c0_2 = arith.constant 0 : index
    %1 = vector.load %arg2[%c0_1, %c0_2] : memref<8x256xf32, #tpu.memory_space<vmem>>, vector<8x256xf32>
    %cst = arith.constant 9.99999997E-7 : f32
    %2 = vector.broadcast %cst : f32 to vector<8x256xf32>
    %3 = arith.maximumf %1, %2 : vector<8x256xf32>
    %4 = math.log %3 : vector<8x256xf32>
    %5 = vector.broadcast %0 : f32 to vector<8x256xf32>
    %6 = arith.mulf %5, %4 : vector<8x256xf32>
    %7 = math.exp %6 : vector<8x256xf32>
    %cst_3 = arith.constant dense<0.000000e+00> : vector<8xf32>
    %8 = vector.multi_reduction <add>, %7, %cst_3 [1] : vector<8x256xf32> to vector<8xf32>
    %9 = vector.shape_cast %8 : vector<8xf32> to vector<8x1xf32>
    %cst_4 = arith.constant 2.560000e+02 : f32
    %10 = vector.broadcast %cst_4 : f32 to vector<8x1xf32>
    %11 = arith.divf %9, %10 : vector<8x1xf32>
    %12 = math.log %11 : vector<8x1xf32>
    %13 = vector.broadcast %0 : f32 to vector<8x1xf32>
    %14 = arith.divf %12, %13 : vector<8x1xf32>
    %15 = math.exp %14 : vector<8x1xf32>
    %c0_5 = arith.constant 0 : index
    %c0_6 = arith.constant 0 : index
    %16 = vector.load %arg3[%c0_5, %c0_6] : memref<8x1xf32, #tpu.memory_space<vmem>>, vector<8x1xf32>
    tpu.vector_store %arg3[%c0_5, %c0_6], %15 {strides = array<i32>} : memref<8x1xf32, #tpu.memory_space<vmem>>, vector<8x1xf32>,
    return
  }
  func.func @transform_0(%arg0: i32) -> (i32, i32) {
    %c0_i32 = arith.constant 0 : i32
    %c0_i32_0 = arith.constant 0 : i32
    %c0_i32_1 = arith.constant 0 : i32
    return %c0_i32, %c0_i32_0 : i32, i32
  }
  func.func @transform_1(%arg0: i32) -> (i32, i32) {
    %c0_i32 = arith.constant 0 : i32
    %c0_i32_0 = arith.constant 0 : i32
    return %arg0, %c0_i32 : i32, i32
  }
  func.func @transform_2(%arg0: i32) -> (i32, i32) {
    %c0_i32 = arith.constant 0 : i32
    %c0_i32_0 = arith.constant 0 : i32
    return %arg0, %c0_i32 : i32, i32
  }
}

</mosaic_0001>

<bundles_post_ra>
// kernel: tpu_custom_call.1
= control target key start
LH: loop header
LB: loop body
LE: loop exit
PB: predicated region body
PF: predicated region fallthrough
CT: control target
= control target key end

     0   :  { %8 = vsyncpa [#allocation4], 0  ;;  %s95_s9 = smov [#allocation3]   ;;  %s120_s0 = inlined_call_operand.<no memory space> [shape: f32[1,1], index: 0, kind: input, shape index: {}]   ;;  %s121_s1 = inlined_call_operand.hbm [shape: f32[8,256], index: 1, kind: input, shape index: {}]   ;;  %s122_s2 = inlined_call_operand.vmem [shape: f32[8,1], index: 2, kind: output, shape index: {}]  }
   0x1   :  { %s17_s10 = sshll.u32 %s95_s9, 4  ;;  %s18_s10 = int_to_ptr.vmem [resolvable:$true] %s17_s10 }
   0x2   :  { %s81_s11 = scalar_lea.vmem %s18_s10, 256  ;;  %p86_p1 = scmp.lt.s32.totalorder %s18_s10, %s18_s10 }
   0x3   :  { %p82_p0 = scmp.ne.s32.totalorder %s18_s10, %s81_s11  ;;  %p87_p2 = scmp.lt.s32.totalorder %s81_s11, %s81_s11 }
   0x5   :  { %p88_p3 = por %p87_p2, %p86_p1 }
   0x7   :  { %p89_p4 = pnand %p88_p3, %p82_p0 }
   0x9   :  { %92 = shalt.err (!%p89_p4)
}
   0xa   :  { %20 = dma.hbm_to_vmem [thread:$0]  %s121_s1, 256, %s18_s10, [#allocation4]  }
   0xb   :  { %93 = dma.done.wait [#allocation4], 256  }
   0xc   :  { %94 = vsyncadd [#allocation4], 4294967040  ;;  %v25_v0 = vld [vmem:[#allocation3] sm:$0xff]  ;;  %v26_v1 = vld [vmem:[#allocation3 + $0x8] sm:$0xff]  ;;  %v33_v5 = vstv %s120_s0  ;;  %vm51_vm0 = vcmask 7168  }
   0xd   :  { %v27_v2 = vmax.f32 %v25_v0, 1e-06  ;;  %v28_v3 = vmax.f32 %v26_v1, 1e-06 }
   0xf   :  { %59 = vlog2.f32 %v27_v2 }
  0x10   :  { %61 = vlog2.f32 %v28_v3 }
  0x1c   :  { %v60_v4 = vpop.eup %59 }
  0x1d   :  { %v62_v6 = vpop.eup %61  ;;  %v30_v7 = vmul.f32 0.6931472, %v60_v4 }
  0x1e   :  { %v32_v8 = vmul.f32 0.6931472, %v62_v6 }
  0x1f   :  { %v34_v9 = vmul.f32 %v33_v5, %v30_v7 }
  0x20   :  { %v35_v10 = vmul.f32 %v33_v5, %v32_v8 }
  0x21   :  { %v36_v11 = vmul.f32 1.442695, %v34_v9 }
  0x22   :  { %v38_v12 = vmul.f32 1.442695, %v35_v10 }
  0x23   :  { %63 = vpow2.f32 %v36_v11 }
  0x24   :  { %65 = vpow2.f32 %v38_v12 }
  0x25   :  { %67 = vrcp.f32 %v33_v5 }
  0x30   :  { %v64_v13 = vpop.eup %63 }
  0x31   :  { %v66_v14 = vpop.eup %65 }
  0x32   :  { %v40_v15 = vadd.f32 %v66_v14, %v64_v13  ;;  %v68_v18 = vpop.eup %67 }
  0x34   :  { %41 = vadd.xlane.f32.xlu0 %v40_v15 }
  0xbd   :  { %v42_v16 = vpop.xlane.xlu0 %41 }
  0xbe   :  { %v44_v17 = vmul.f32 0.00390625, %v42_v16 }
  0xc0   :  { %69 = vlog2.f32 %v44_v17 }
  0xcd   :  { %v70_v19 = vpop.eup %69 }
  0xce   :  { %v46_v20 = vmul.f32 0.6931472, %v70_v19 }
  0xd0   :  { %v48_v21 = vmul.f32 %v68_v18, %v46_v20 }
  0xd2   :  { %v49_v22 = vmul.f32 1.442695, %v48_v21 }
  0xd4   :  { %71 = vpow2.f32 %v49_v22 }
  0xe1   :  { %v72_v23 = vpop.eup %71 }
  0xe2   :  { %52 = vst.msk [vmem:[%s122_s2] sm:$0xff] %vm51_vm0, %v72_v23 }
  0xe3   :  { %57 = vsyncpa [#allocation4], 1 }

</bundles_post_ra>
